<compile_context>
chip_gen: v7x
topology: tpu7x:2x2x1
jax: 0.10.0
libtpu: 0.0.40
codegen_flags: <defaults>
</compile_context>

<pallas_src>
import functools

import jax
import jax.numpy as jnp
import numpy as np
from jax.experimental import pallas as pl
from jax.experimental.pallas import tpu as pltpu

BIG_NEG = -1e30  # finite stand-in for -inf (exp underflows to exactly 0.0)


def _mask_to(cond, dtype):
    """Materialize a boolean mask as a 0/1 matrix of the given dtype."""
    return jnp.where(cond, 1.0, 0.0).astype(dtype)


# ----------------------------------------------------------------------------
# Fused kernel.
#   grid: edge tiles (sequential: last-write-wins scatter + shared accumulators)
#   output: [N, F_pad] f32 (lane-dense; wrapper slices the first F columns)
# ----------------------------------------------------------------------------
def gat_fused_kernel(
    x_ref,        # [N, Din]           f32 (resident)
    wlin_ref,     # [Din, H*F]         f32
    blin_ref,     # [1, H*F]           f32
    asrc_ref,     # [H*F, H]           f32 (block-diagonal att_src)
    adst_ref,     # [H*F, H]           f32 (block-diagonal att_dst)
    we1_ref,      # [De, hidden]       f32
    be1_ref,      # [1, hidden]        f32
    we2_ref,      # [hidden, H]        f32
    be2_ref,      # [1, H]             f32
    hexp_ref,     # [H, H*F]           f32 (broadcast per-head scalar over F lanes)
    hmean_ref,    # [H*F, F_pad]       f32 (mean over heads, zero-padded lanes)
    eattr_ref,    # [TE, De]           f32 (edge tile)
    srcc_ref,     # [TE, 1]            i32 (src, column form; -1 = padding)
    dstc_ref,     # [TE, 1]            i32 (dst, column form; -1 = padding)
    srcr_ref,     # [1, 1, TE]         i32 (src, row form)
    out_ref,      # [N, F_pad]         f32 (resident output; written at finalize)
    xlin_sc,      # [N, H*F] bf16 scratch: node linear output (feature path)
    nsrc_sc,      # [N, H]   f32  scratch: per-node src logits
    ndst_sc,      # [N, H]   f32  scratch: per-node dst logits
    scat_sc,      # [N, H]   f32  scratch: last-edge-per-src logit table
    agg_sc,       # [N, H*F] f32  scratch: neighbor-feature scatter-add accumulator
):
    f32 = jnp.float32
    bf16 = jnp.bfloat16
    t = pl.program_id(0)
    nt = pl.num_programs(0)
    TE = eattr_ref.shape[0]
    Np, H = scat_sc.shape

    # ---- once: node linear and node-level attention logits (f32) ----------
    @pl.when(t == 0)
    def _init():
        xlin = (jnp.dot(x_ref[...], wlin_ref[...], preferred_element_type=f32)
                + blin_ref[...])                                    # [N, H*F]
        xlin_sc[...] = xlin.astype(bf16)
        nsrc_sc[...] = jnp.dot(xlin, asrc_ref[...], preferred_element_type=f32)
        ndst_sc[...] = jnp.dot(xlin, adst_ref[...], preferred_element_type=f32)
        scat_sc[...] = jnp.full(scat_sc.shape, BIG_NEG, f32)
        agg_sc[...] = jnp.zeros_like(agg_sc)

    # ---- per-tile: build on-chip one-hots from the int32 index tiles -------
    src_c = srcc_ref[...]                                           # [TE, 1]
    dst_c = dstc_ref[...]                                           # [TE, 1]
    lanes_n = jax.lax.broadcasted_iota(jnp.int32, (TE, Np), 1)
    src_hit_e = src_c == lanes_n                                    # [TE, N]
    dst_hit_e = dst_c == lanes_n                                    # [TE, N]
    g_src = _mask_to(src_hit_e, f32)    # logit gather stays f32
    g_dst_f = _mask_to(dst_hit_e, f32)
    g_dst_b = _mask_to(dst_hit_e, bf16)  # feature gather: bf16 MXU path (exact 0/1)

    # per-edge attention logits: gather per-node logits (width H, not H*F)
    alpha = (jnp.dot(g_src, nsrc_sc[...], preferred_element_type=f32)
             + jnp.dot(g_dst_f, ndst_sc[...], preferred_element_type=f32))  # [TE, H]

    # edge feature MLP: Linear(De, hidden) -> ReLU -> Linear(hidden, H)
    h1 = jnp.dot(eattr_ref[...], we1_ref[...], preferred_element_type=f32) + be1_ref[...]
    h1 = jnp.maximum(h1, 0.0)
    alpha = alpha + jnp.dot(h1, we2_ref[...], preferred_element_type=f32) + be2_ref[...]

    # leaky_relu(negative_slope=0.2)
    alpha = jnp.where(alpha > 0, alpha, 0.2 * alpha)

    # ---- "last edge per source node wins" scatter into the [N, H] table ----
    # (tiles are processed in increasing edge order, so overwriting rows that
    #  this tile touches preserves global last-write-wins semantics)
    src_r = srcr_ref[0]                                             # [1, TE]
    node_rows = jax.lax.broadcasted_iota(jnp.int32, (Np, TE), 0)
    lane_e = jax.lax.broadcasted_iota(jnp.int32, (Np, TE), 1)
    hit = node_rows == src_r                                        # [N, TE]
    last_e = jnp.max(jnp.where(hit, lane_e, -1), axis=1, keepdims=True)  # [N, 1]
    touched = last_e >= 0
    lsel = _mask_to(jnp.logical_and(hit, lane_e == last_e), f32)    # [N, TE]
    tile_scat = jnp.dot(lsel, alpha, preferred_element_type=f32)    # [N, H]
    scat_sc[...] = jnp.where(touched, tile_scat, scat_sc[...])

    # ---- neighbor-feature aggregation (attention applied at finalize) ------
    # gather dst features, then scatter-add onto src nodes.
    # padded edges (src == dst == -1) contribute zero rows / zero columns.
    gathered = jnp.dot(g_dst_b, xlin_sc[...], preferred_element_type=f32)   # [TE, H*F]
    s_oh = _mask_to(hit, bf16)                                              # [N, TE]
    agg_sc[...] += jnp.dot(s_oh, gathered.astype(bf16),
                           preferred_element_type=f32)                      # [N, H*F]

    # ---- finalize: softmax over the NODE axis, attention weighting, head mean
    @pl.when(t == nt - 1)
    def _finalize():
        scat = scat_sc[...]
        m = jnp.max(scat, axis=0, keepdims=True)                    # [1, H]
        e = jnp.exp(scat - m)                                       # exp(BIG_NEG)->0
        denom = jnp.sum(e, axis=0, keepdims=True)
        # guard denom (fully-masked column) instead of producing NaN
        soft = e * pl.reciprocal(jnp.maximum(denom, 1e-30), approx=True)  # [N, H]
        # w[n, h*F+f] = soft[n, h]; apply attention + mean over heads in f32
        w = jnp.dot(soft, hexp_ref[...], preferred_element_type=f32)       # [N, H*F]
        weighted = agg_sc[...] * w
        out_ref[...] = jnp.dot(weighted, hmean_ref[...],
                               preferred_element_type=f32)                  # [N, F_pad]


def _const_spec(shape):
    return pl.BlockSpec(shape, lambda t: (0,) * len(shape))


# ----------------------------------------------------------------------------
# Wrapper: index glue (padding, both index orientations, att reshaping) + the
# single fused pallas_call.
# ----------------------------------------------------------------------------
@functools.partial(jax.jit, static_argnames=("heads", "out_features"))
def gat_conv_forward(x, edge_index, edge_attr, params, *, heads, out_features):
    N, Din = x.shape
    E = edge_index.shape[1]
    De = edge_attr.shape[1]
    hidden = params["w_e1"].shape[1]
    H, F = heads, out_features
    HF = H * F

    # edge tile size: multiple of 8 sublanes; 128 is a v7x-safe default.
    TE = 128 if E >= 128 else 8
    n_tiles = max(1, -(-E // TE))
    E_pad = n_tiles * TE
    pad = E_pad - E

    src = edge_index[0].astype(jnp.int32)
    dst = edge_index[1].astype(jnp.int32)
    if pad:
        src = jnp.concatenate([src, jnp.full((pad,), -1, jnp.int32)])
        dst = jnp.concatenate([dst, jnp.full((pad,), -1, jnp.int32)])
        edge_attr = jnp.concatenate(
            [edge_attr, jnp.zeros((pad, De), edge_attr.dtype)], axis=0)

    src_col = src[:, None]                      # [E_pad, 1]
    dst_col = dst[:, None]                      # [E_pad, 1]
    src_row = src.reshape(n_tiles, 1, TE)       # [n_tiles, 1, TE]

    # att_src/att_dst as block-diagonal matmul operands: a[h*F+f, h] = att[h, f]
    eye_h = jnp.eye(H, dtype=jnp.float32)
    a_src = (params["att_src"][:, :, None] * eye_h[:, None, :]).reshape(HF, H)
    a_dst = (params["att_dst"][:, :, None] * eye_h[:, None, :]).reshape(HF, H)

    # broadcast-per-head and (lane-dense, padded) head-mean matrices
    head_exp = jnp.repeat(eye_h, F, axis=1)                          # [H, H*F]
    F_pad = max(128, ((F + 127) // 128) * 128)
    head_mean = jnp.zeros((HF, F_pad), jnp.float32)
    head_mean = head_mean.at[:, :F].set(
        jnp.tile(jnp.eye(F, dtype=jnp.float32), (H, 1)) / H)         # [H*F, F_pad]

    cparams = pltpu.CompilerParams(
        # the edge axis is a sequential reduction (shared accumulator /
        # last-write-wins scatter); for v7x megacore one would split edges into
        # two independent partial accumulators.
        dimension_semantics=("arbitrary",),
        vmem_limit_bytes=48 * 1024 * 1024,     # <= 48 MiB: safe on v7x's 64 MiB
    )

    out_pad = pl.pallas_call(
        gat_fused_kernel,
        out_shape=jax.ShapeDtypeStruct((N, F_pad), jnp.float32),
        grid_spec=pltpu.PrefetchScalarGridSpec(
            num_scalar_prefetch=0,
            grid=(n_tiles,),
            in_specs=[
                _const_spec((N, Din)),                       # x
                _const_spec((Din, HF)),                      # w_lin
                _const_spec((1, HF)),                        # b_lin
                _const_spec((HF, H)),                        # a_src
                _const_spec((HF, H)),                        # a_dst
                _const_spec((De, hidden)),                   # w_e1
                _const_spec((1, hidden)),                    # b_e1
                _const_spec((hidden, H)),                    # w_e2
                _const_spec((1, H)),                         # b_e2
                _const_spec((H, HF)),                        # head_exp
                _const_spec((HF, F_pad)),                    # head_mean
                pl.BlockSpec((TE, De), lambda t: (t, 0)),    # edge_attr tile
                pl.BlockSpec((TE, 1), lambda t: (t, 0)),     # src (col)
                pl.BlockSpec((TE, 1), lambda t: (t, 0)),     # dst (col)
                pl.BlockSpec((1, 1, TE), lambda t: (t, 0, 0)),  # src (row)
            ],
            out_specs=_const_spec((N, F_pad)),
            scratch_shapes=[
                pltpu.VMEM((N, HF), jnp.bfloat16),   # xlin
                pltpu.VMEM((N, H), jnp.float32),     # per-node src logits
                pltpu.VMEM((N, H), jnp.float32),     # per-node dst logits
                pltpu.VMEM((N, H), jnp.float32),     # last-write-wins table
                pltpu.VMEM((N, HF), jnp.float32),    # neighbor-feature accumulator
            ],
        ),
        compiler_params=cparams,
    )(x, params["w_lin"], params["b_lin"], a_src, a_dst,
      params["w_e1"], params["b_e1"], params["w_e2"], params["b_e2"],
      head_exp, head_mean, edge_attr, src_col, dst_col, src_row)

    return out_pad[:, :F]


# ----------------------------------------------------------------------------
# Pure-JAX reference (eval-mode GATConvLayer forward, mirrors torch semantics)
# ----------------------------------------------------------------------------
def reference_forward(x, edge_index, edge_attr, params, *, heads, out_features):
    N = x.shape[0]
    H, F = heads, out_features
    src, dst = edge_index[0], edge_index[1]
    E = src.shape[0]

    xlin = x @ params["w_lin"] + params["b_lin"]
    xr = xlin.reshape(N, H, F)
    a_s = jnp.sum(xr[src] * params["att_src"][None], axis=-1)       # [E, H]
    a_d = jnp.sum(xr[dst] * params["att_dst"][None], axis=-1)       # [E, H]
    h1 = jax.nn.relu(edge_attr @ params["w_e1"] + params["b_e1"])
    alpha = a_s + a_d + h1 @ params["w_e2"] + params["b_e2"]
    alpha = jnp.where(alpha > 0, alpha, 0.2 * alpha)

    # softmax_by_src: output[src] = alpha (last write wins), softmax over dim 0
    order = jnp.arange(E)
    hit = src[None, :] == jnp.arange(N)[:, None]                    # [N, E]
    last = jnp.max(jnp.where(hit, order[None, :], -1), axis=1)      # [N]
    has = last >= 0
    table = jnp.where(has[:, None], alpha[jnp.clip(last, 0)], -jnp.inf)
    soft = jax.nn.softmax(table, axis=0)                            # [N, H]
    alpha_e = soft[src]                                             # [E, H]

    out = jnp.zeros((N, H, F)).at[src].add(xr[dst] * alpha_e[:, :, None])
    return out.mean(axis=1)


# ----------------------------------------------------------------------------
# Deterministic parameter init (synthetic; shapes match GATConvLayer.__init__)
# ----------------------------------------------------------------------------
def init_params(key, in_features, out_features, edge_features, heads, hidden=32):
    HF = heads * out_features
    ks = jax.random.split(key, 8)

    def xavier(k, shape, fan_in, fan_out):
        a = (6.0 / (fan_in + fan_out)) ** 0.5
        return jax.random.uniform(k, shape, jnp.float32, -a, a)

    return {
        "w_lin": xavier(ks[0], (in_features, HF), in_features, HF),
        "b_lin": 0.01 * jax.random.normal(ks[1], (1, HF), jnp.float32),
        "att_src": xavier(ks[2], (heads, out_features), out_features, heads),
        "att_dst": xavier(ks[3], (heads, out_features), out_features, heads),
        "w_e1": xavier(ks[4], (edge_features, hidden), edge_features, hidden),
        "b_e1": 0.01 * jax.random.normal(ks[5], (1, hidden), jnp.float32),
        "w_e2": xavier(ks[6], (hidden, heads), hidden, heads),
        "b_e2": 0.01 * jax.random.normal(ks[7], (1, heads), jnp.float32),
    }


if __name__ == "__main__":
    # Small shapes: 10 nodes, 20 edges (padded to 24 = 3 tiles of 8),
    # in=16, out=8, edge_features=4, heads=4.
    N, E = 10, 20
    in_features, out_features, edge_features, heads = 16, 8, 4, 4

    key = jax.random.PRNGKey(0)
    k_p, k_x, k_s, k_d, k_e = jax.random.split(key, 5)

    params = init_params(k_p, in_features, out_features, edge_features, heads)

    x = jax.random.normal(k_x, (N, in_features), jnp.float32)
    src = jax.random.randint(k_s, (E,), 0, N, dtype=jnp.int32)
    dst = jax.random.randint(k_d, (E,), 0, N, dtype=jnp.int32)
    edge_index = jnp.stack([src, dst], axis=0)          # [2, E]
    edge_attr = jax.random.normal(k_e, (E, edge_features), jnp.float32)

    out = gat_conv_forward(
        x, edge_index, edge_attr, params, heads=heads, out_features=out_features
    )
    out = jax.block_until_ready(out)
    assert out.shape == (N, out_features)
    assert bool(jnp.all(jnp.isfinite(out)))

    # Correctness vs. pure-JAX reference (bf16 feature path -> loose tolerance).
    ref = reference_forward(
        x, edge_index, edge_attr, params, heads=heads, out_features=out_features
    )
    np.testing.assert_allclose(np.asarray(out), np.asarray(ref), rtol=5e-2, atol=5e-2)

    print("KERNEL_OK")
</pallas_src>

<mosaic_0001>
module attributes {stable_mosaic.version = 11 : i64} {
  func.func @gat_fused_kernel(%arg0: i32, %arg1: memref<10x16xf32, #tpu.memory_space<vmem>>, %arg2: memref<16x32xf32, #tpu.memory_space<vmem>>, %arg3: memref<1x32xf32, #tpu.memory_space<vmem>>, %arg4: memref<32x4xf32, #tpu.memory_space<vmem>>, %arg5: memref<32x4xf32, #tpu.memory_space<vmem>>, %arg6: memref<4x32xf32, #tpu.memory_space<vmem>>, %arg7: memref<1x32xf32, #tpu.memory_space<vmem>>, %arg8: memref<32x4xf32, #tpu.memory_space<vmem>>, %arg9: memref<1x4xf32, #tpu.memory_space<vmem>>, %arg10: memref<4x32xf32, #tpu.memory_space<vmem>>, %arg11: memref<32x128xf32, #tpu.memory_space<vmem>>, %arg12: memref<8x4xf32, #tpu.memory_space<vmem>>, %arg13: memref<8x1xi32, #tpu.memory_space<vmem>>, %arg14: memref<8x1xi32, #tpu.memory_space<vmem>>, %arg15: memref<1x1x8xi32, #tpu.memory_space<vmem>>, %arg16: memref<10x128xf32, #tpu.memory_space<vmem>>, %arg17: memref<10x32xbf16, #tpu.memory_space<vmem>>, %arg18: memref<10x4xf32, #tpu.memory_space<vmem>>, %arg19: memref<10x4xf32, #tpu.memory_space<vmem>>, %arg20: memref<10x4xf32, #tpu.memory_space<vmem>>, %arg21: memref<10x32xf32, #tpu.memory_space<vmem>>) attributes {dimension_semantics = [#tpu.dimension_semantics<arbitrary>], iteration_bounds = array<i64: 3>, scalar_prefetch = 0 : i64, scratch_operands = 5 : i64, tpu.core_type = #tpu.core_type<tc>, window_params = [{pipeline_mode = #tpu.pipeline_mode<synchronous>, transform_indices = @transform_0, window_bounds = array<i64: 10, 16>}, {pipeline_mode = #tpu.pipeline_mode<synchronous>, transform_indices = @transform_1, window_bounds = array<i64: 16, 32>}, {pipeline_mode = #tpu.pipeline_mode<synchronous>, transform_indices = @transform_2, window_bounds = array<i64: 1, 32>}, {pipeline_mode = #tpu.pipeline_mode<synchronous>, transform_indices = @transform_3, window_bounds = array<i64: 32, 4>}, {pipeline_mode = #tpu.pipeline_mode<synchronous>, transform_indices = @transform_4, window_bounds = array<i64: 32, 4>}, {pipeline_mode = #tpu.pipeline_mode<synchronous>, transform_indices = @transform_5, window_bounds = array<i64: 4, 32>}, {pipeline_mode = #tpu.pipeline_mode<synchronous>, transform_indices = @transform_6, window_bounds = array<i64: 1, 32>}, {pipeline_mode = #tpu.pipeline_mode<synchronous>, transform_indices = @transform_7, window_bounds = array<i64: 32, 4>}, {pipeline_mode = #tpu.pipeline_mode<synchronous>, transform_indices = @transform_8, window_bounds = array<i64: 1, 4>}, {pipeline_mode = #tpu.pipeline_mode<synchronous>, transform_indices = @transform_9, window_bounds = array<i64: 4, 32>}, {pipeline_mode = #tpu.pipeline_mode<synchronous>, transform_indices = @transform_10, window_bounds = array<i64: 32, 128>}, {transform_indices = @transform_11, window_bounds = array<i64: 8, 4>}, {transform_indices = @transform_12, window_bounds = array<i64: 8, 1>}, {transform_indices = @transform_13, window_bounds = array<i64: 8, 1>}, {transform_indices = @transform_14, window_bounds = array<i64: 1, 1, 8>}, {pipeline_mode = #tpu.pipeline_mode<synchronous>, transform_indices = @transform_15, window_bounds = array<i64: 10, 128>}]} {
    %c0_i32 = arith.constant 0 : i32
    %0 = arith.cmpi eq, %arg0, %c0_i32 : i32
    %1 = arith.extui %0 : i1 to i32
    %c0_i32_0 = arith.constant 0 : i32
    %2 = arith.cmpi ne, %1, %c0_i32_0 : i32
    scf.if %2 {
      %c0_53 = arith.constant 0 : index
      %c0_54 = arith.constant 0 : index
      %82 = vector.load %arg1[%c0_53, %c0_54] : memref<10x16xf32, #tpu.memory_space<vmem>>, vector<10x16xf32>
      %c0_55 = arith.constant 0 : index
      %c0_56 = arith.constant 0 : index
      %83 = vector.load %arg2[%c0_55, %c0_56] : memref<16x32xf32, #tpu.memory_space<vmem>>, vector<16x32xf32>
      %cst_57 = arith.constant dense<0.000000e+00> : vector<10x32xf32>
      %84 = tpu.matmul %82, %83, %cst_57 {dimension_numbers = #tpu.dot_dimension_numbers<[1], [0], [0], [1], [0, 0, 1, 1], [], []>} : vector<10x16xf32>, vector<16x32xf32>, vector<10x32xf32> -> vector<10x32xf32>
      %c0_58 = arith.constant 0 : index
      %c0_59 = arith.constant 0 : index
      %85 = vector.load %arg3[%c0_58, %c0_59] : memref<1x32xf32, #tpu.memory_space<vmem>>, vector<1x32xf32>
      %86 = vector.broadcast %85 : vector<1x32xf32> to vector<10x32xf32>
      %87 = arith.addf %84, %86 : vector<10x32xf32>
      %88 = arith.truncf %87 : vector<10x32xf32> to vector<10x32xbf16>
      %c0_60 = arith.constant 0 : index
      %c0_61 = arith.constant 0 : index
      %89 = vector.load %arg17[%c0_60, %c0_61] : memref<10x32xbf16, #tpu.memory_space<vmem>>, vector<10x32xbf16>
      tpu.vector_store %arg17[%c0_60, %c0_61], %88 {strides = array<i32>} : memref<10x32xbf16, #tpu.memory_space<vmem>>, vector<10x32xbf16>,
      %c0_62 = arith.constant 0 : index
      %c0_63 = arith.constant 0 : index
      %90 = vector.load %arg4[%c0_62, %c0_63] : memref<32x4xf32, #tpu.memory_space<vmem>>, vector<32x4xf32>
      %cst_64 = arith.constant dense<0.000000e+00> : vector<10x4xf32>
      %91 = tpu.matmul %87, %90, %cst_64 {dimension_numbers = #tpu.dot_dimension_numbers<[1], [0], [0], [1], [0, 0, 1, 1], [], []>} : vector<10x32xf32>, vector<32x4xf32>, vector<10x4xf32> -> vector<10x4xf32>
      %c0_65 = arith.constant 0 : index
      %c0_66 = arith.constant 0 : index
      %92 = vector.load %arg18[%c0_65, %c0_66] : memref<10x4xf32, #tpu.memory_space<vmem>>, vector<10x4xf32>
      tpu.vector_store %arg18[%c0_65, %c0_66], %91 {strides = array<i32>} : memref<10x4xf32, #tpu.memory_space<vmem>>, vector<10x4xf32>,
      %c0_67 = arith.constant 0 : index
      %c0_68 = arith.constant 0 : index
      %93 = vector.load %arg5[%c0_67, %c0_68] : memref<32x4xf32, #tpu.memory_space<vmem>>, vector<32x4xf32>
      %cst_69 = arith.constant dense<0.000000e+00> : vector<10x4xf32>
      %94 = tpu.matmul %87, %93, %cst_69 {dimension_numbers = #tpu.dot_dimension_numbers<[1], [0], [0], [1], [0, 0, 1, 1], [], []>} : vector<10x32xf32>, vector<32x4xf32>, vector<10x4xf32> -> vector<10x4xf32>
      %c0_70 = arith.constant 0 : index
      %c0_71 = arith.constant 0 : index
      %95 = vector.load %arg19[%c0_70, %c0_71] : memref<10x4xf32, #tpu.memory_space<vmem>>, vector<10x4xf32>
      tpu.vector_store %arg19[%c0_70, %c0_71], %94 {strides = array<i32>} : memref<10x4xf32, #tpu.memory_space<vmem>>, vector<10x4xf32>,
      %cst_72 = arith.constant -1.000000e+30 : f32
      %96 = vector.broadcast %cst_72 : f32 to vector<10x4xf32>
      %c0_73 = arith.constant 0 : index
      %c0_74 = arith.constant 0 : index
      %97 = vector.load %arg20[%c0_73, %c0_74] : memref<10x4xf32, #tpu.memory_space<vmem>>, vector<10x4xf32>
      tpu.vector_store %arg20[%c0_73, %c0_74], %96 {strides = array<i32>} : memref<10x4xf32, #tpu.memory_space<vmem>>, vector<10x4xf32>,
      %cst_75 = arith.constant 0.000000e+00 : f32
      %98 = vector.broadcast %cst_75 : f32 to vector<10x32xf32>
      %c0_76 = arith.constant 0 : index
      %c0_77 = arith.constant 0 : index
      %99 = vector.load %arg21[%c0_76, %c0_77] : memref<10x32xf32, #tpu.memory_space<vmem>>, vector<10x32xf32>
      tpu.vector_store %arg21[%c0_76, %c0_77], %98 {strides = array<i32>} : memref<10x32xf32, #tpu.memory_space<vmem>>, vector<10x32xf32>,
    } else {
    }
    %c0 = arith.constant 0 : index
    %c0_1 = arith.constant 0 : index
    %3 = vector.load %arg13[%c0, %c0_1] : memref<8x1xi32, #tpu.memory_space<vmem>>, vector<8x1xi32>
    %c0_2 = arith.constant 0 : index
    %c0_3 = arith.constant 0 : index
    %4 = vector.load %arg14[%c0_2, %c0_3] : memref<8x1xi32, #tpu.memory_space<vmem>>, vector<8x1xi32>
    %5 = tpu.iota {dimensions = array<i32: 1>} : vector<8x10xi32>
    %6 = vector.broadcast %3 : vector<8x1xi32> to vector<8x10xi32>
    %7 = arith.cmpi eq, %6, %5 : vector<8x10xi32>
    %8 = vector.broadcast %4 : vector<8x1xi32> to vector<8x10xi32>
    %9 = arith.cmpi eq, %8, %5 : vector<8x10xi32>
    %cst = arith.constant 1.000000e+00 : f32
    %cst_4 = arith.constant 0.000000e+00 : f32
    %10 = vector.broadcast %cst : f32 to vector<8x10xf32>
    %11 = vector.broadcast %cst_4 : f32 to vector<8x10xf32>
    %12 = arith.select %7, %10, %11 : vector<8x10xi1>, vector<8x10xf32>
    %cst_5 = arith.constant 1.000000e+00 : f32
    %cst_6 = arith.constant 0.000000e+00 : f32
    %13 = vector.broadcast %cst_5 : f32 to vector<8x10xf32>
    %14 = vector.broadcast %cst_6 : f32 to vector<8x10xf32>
    %15 = arith.select %9, %13, %14 : vector<8x10xi1>, vector<8x10xf32>
    %cst_7 = arith.constant 1.000000e+00 : f32
    %cst_8 = arith.constant 0.000000e+00 : f32
    %16 = vector.broadcast %cst_7 : f32 to vector<8x10xf32>
    %17 = vector.broadcast %cst_8 : f32 to vector<8x10xf32>
    %18 = arith.select %9, %16, %17 : vector<8x10xi1>, vector<8x10xf32>
    %19 = arith.truncf %18 : vector<8x10xf32> to vector<8x10xbf16>
    %c0_9 = arith.constant 0 : index
    %c0_10 = arith.constant 0 : index
    %20 = vector.load %arg18[%c0_9, %c0_10] : memref<10x4xf32, #tpu.memory_space<vmem>>, vector<10x4xf32>
    %cst_11 = arith.constant dense<0.000000e+00> : vector<8x4xf32>
    %21 = tpu.matmul %12, %20, %cst_11 {dimension_numbers = #tpu.dot_dimension_numbers<[1], [0], [0], [1], [0, 0, 1, 1], [], []>} : vector<8x10xf32>, vector<10x4xf32>, vector<8x4xf32> -> vector<8x4xf32>
    %c0_12 = arith.constant 0 : index
    %c0_13 = arith.constant 0 : index
    %22 = vector.load %arg19[%c0_12, %c0_13] : memref<10x4xf32, #tpu.memory_space<vmem>>, vector<10x4xf32>
    %cst_14 = arith.constant dense<0.000000e+00> : vector<8x4xf32>
    %23 = tpu.matmul %15, %22, %cst_14 {dimension_numbers = #tpu.dot_dimension_numbers<[1], [0], [0], [1], [0, 0, 1, 1], [], []>} : vector<8x10xf32>, vector<10x4xf32>, vector<8x4xf32> -> vector<8x4xf32>
    %24 = arith.addf %21, %23 : vector<8x4xf32>
    %c0_15 = arith.constant 0 : index
    %c0_16 = arith.constant 0 : index
    %25 = vector.load %arg12[%c0_15, %c0_16] : memref<8x4xf32, #tpu.memory_space<vmem>>, vector<8x4xf32>
    %c0_17 = arith.constant 0 : index
    %c0_18 = arith.constant 0 : index
    %26 = vector.load %arg6[%c0_17, %c0_18] : memref<4x32xf32, #tpu.memory_space<vmem>>, vector<4x32xf32>
    %cst_19 = arith.constant dense<0.000000e+00> : vector<8x32xf32>
    %27 = tpu.matmul %25, %26, %cst_19 {dimension_numbers = #tpu.dot_dimension_numbers<[1], [0], [0], [1], [0, 0, 1, 1], [], []>} : vector<8x4xf32>, vector<4x32xf32>, vector<8x32xf32> -> vector<8x32xf32>
    %c0_20 = arith.constant 0 : index
    %c0_21 = arith.constant 0 : index
    %28 = vector.load %arg7[%c0_20, %c0_21] : memref<1x32xf32, #tpu.memory_space<vmem>>, vector<1x32xf32>
    %29 = vector.broadcast %28 : vector<1x32xf32> to vector<8x32xf32>
    %30 = arith.addf %27, %29 : vector<8x32xf32>
    %cst_22 = arith.constant 0.000000e+00 : f32
    %31 = vector.broadcast %cst_22 : f32 to vector<8x32xf32>
    %32 = arith.maximumf %30, %31 : vector<8x32xf32>
    %c0_23 = arith.constant 0 : index
    %c0_24 = arith.constant 0 : index
    %33 = vector.load %arg8[%c0_23, %c0_24] : memref<32x4xf32, #tpu.memory_space<vmem>>, vector<32x4xf32>
    %cst_25 = arith.constant dense<0.000000e+00> : vector<8x4xf32>
    %34 = tpu.matmul %32, %33, %cst_25 {dimension_numbers = #tpu.dot_dimension_numbers<[1], [0], [0], [1], [0, 0, 1, 1], [], []>} : vector<8x32xf32>, vector<32x4xf32>, vector<8x4xf32> -> vector<8x4xf32>
    %35 = arith.addf %24, %34 : vector<8x4xf32>
    %c0_26 = arith.constant 0 : index
    %c0_27 = arith.constant 0 : index
    %36 = vector.load %arg9[%c0_26, %c0_27] : memref<1x4xf32, #tpu.memory_space<vmem>>, vector<1x4xf32>
    %37 = vector.broadcast %36 : vector<1x4xf32> to vector<8x4xf32>
    %38 = arith.addf %35, %37 : vector<8x4xf32>
    %cst_28 = arith.constant 0.000000e+00 : f32
    %39 = vector.broadcast %cst_28 : f32 to vector<8x4xf32>
    %40 = arith.cmpf ogt, %38, %39 : vector<8x4xf32>
    %cst_29 = arith.constant 2.000000e-01 : f32
    %41 = vector.broadcast %cst_29 : f32 to vector<8x4xf32>
    %42 = arith.mulf %41, %38 : vector<8x4xf32>
    %43 = arith.select %40, %38, %42 : vector<8x4xi1>, vector<8x4xf32>
    %c0_30 = arith.constant 0 : index
    %c0_31 = arith.constant 0 : index
    %c0_32 = arith.constant 0 : index
    %44 = vector.load %arg15[%c0_30, %c0_31, %c0_32] : memref<1x1x8xi32, #tpu.memory_space<vmem>>, vector<1x1x8xi32>
    %45 = vector.shape_cast %44 : vector<1x1x8xi32> to vector<1x8xi32>
    %46 = tpu.iota {dimensions = array<i32: 0>} : vector<10x8xi32>
    %47 = tpu.iota {dimensions = array<i32: 1>} : vector<10x8xi32>
    %48 = vector.broadcast %45 : vector<1x8xi32> to vector<10x8xi32>
    %49 = arith.cmpi eq, %46, %48 : vector<10x8xi32>
    %c-1_i32 = arith.constant -1 : i32
    %50 = vector.broadcast %c-1_i32 : i32 to vector<10x8xi32>
    %51 = arith.select %49, %47, %50 : vector<10x8xi1>, vector<10x8xi32>
    %cst_33 = arith.constant dense<-2147483648> : vector<10xi32>
    %52 = vector.multi_reduction <maxsi>, %51, %cst_33 [1] : vector<10x8xi32> to vector<10xi32>
    %53 = vector.shape_cast %52 : vector<10xi32> to vector<10x1xi32>
    %c0_i32_34 = arith.constant 0 : i32
    %54 = vector.broadcast %c0_i32_34 : i32 to vector<10x1xi32>
    %55 = arith.cmpi sge, %53, %54 : vector<10x1xi32>
    %56 = vector.broadcast %53 : vector<10x1xi32> to vector<10x8xi32>
    %57 = arith.cmpi eq, %47, %56 : vector<10x8xi32>
    %58 = arith.andi %49, %57 : vector<10x8xi1>
    %cst_35 = arith.constant 1.000000e+00 : f32
    %cst_36 = arith.constant 0.000000e+00 : f32
    %59 = vector.broadcast %cst_35 : f32 to vector<10x8xf32>
    %60 = vector.broadcast %cst_36 : f32 to vector<10x8xf32>
    %61 = arith.select %58, %59, %60 : vector<10x8xi1>, vector<10x8xf32>
    %cst_37 = arith.constant dense<0.000000e+00> : vector<10x4xf32>
    %62 = tpu.matmul %61, %43, %cst_37 {dimension_numbers = #tpu.dot_dimension_numbers<[1], [0], [0], [1], [0, 0, 1, 1], [], []>} : vector<10x8xf32>, vector<8x4xf32>, vector<10x4xf32> -> vector<10x4xf32>
    %c0_38 = arith.constant 0 : index
    %c0_39 = arith.constant 0 : index
    %63 = vector.load %arg20[%c0_38, %c0_39] : memref<10x4xf32, #tpu.memory_space<vmem>>, vector<10x4xf32>
    %64 = vector.shape_cast %55 : vector<10x1xi1> to vector<10x1xi1>
    %65 = vector.broadcast %64 : vector<10x1xi1> to vector<10x4xi1>
    %66 = arith.select %65, %62, %63 : vector<10x4xi1>, vector<10x4xf32>
    %c0_40 = arith.constant 0 : index
    %c0_41 = arith.constant 0 : index
    %67 = vector.load %arg20[%c0_40, %c0_41] : memref<10x4xf32, #tpu.memory_space<vmem>>, vector<10x4xf32>
    tpu.vector_store %arg20[%c0_40, %c0_41], %66 {strides = array<i32>} : memref<10x4xf32, #tpu.memory_space<vmem>>, vector<10x4xf32>,
    %c0_42 = arith.constant 0 : index
    %c0_43 = arith.constant 0 : index
    %68 = vector.load %arg17[%c0_42, %c0_43] : memref<10x32xbf16, #tpu.memory_space<vmem>>, vector<10x32xbf16>
    %cst_44 = arith.constant dense<0.000000e+00> : vector<8x32xf32>
    %69 = tpu.matmul %19, %68, %cst_44 {dimension_numbers = #tpu.dot_dimension_numbers<[1], [0], [0], [1], [0, 0, 1, 1], [], []>} : vector<8x10xbf16>, vector<10x32xbf16>, vector<8x32xf32> -> vector<8x32xf32>
    %cst_45 = arith.constant 1.000000e+00 : f32
    %cst_46 = arith.constant 0.000000e+00 : f32
    %70 = vector.broadcast %cst_45 : f32 to vector<10x8xf32>
    %71 = vector.broadcast %cst_46 : f32 to vector<10x8xf32>
    %72 = arith.select %49, %70, %71 : vector<10x8xi1>, vector<10x8xf32>
    %73 = arith.truncf %72 : vector<10x8xf32> to vector<10x8xbf16>
    %c0_47 = arith.constant 0 : index
    %c0_48 = arith.constant 0 : index
    %74 = vector.load %arg21[%c0_47, %c0_48] : memref<10x32xf32, #tpu.memory_space<vmem>>, vector<10x32xf32>
    %75 = arith.truncf %69 : vector<8x32xf32> to vector<8x32xbf16>
    %cst_49 = arith.constant dense<0.000000e+00> : vector<10x32xf32>
    %76 = tpu.matmul %73, %75, %cst_49 {dimension_numbers = #tpu.dot_dimension_numbers<[1], [0], [0], [1], [0, 0, 1, 1], [], []>} : vector<10x8xbf16>, vector<8x32xbf16>, vector<10x32xf32> -> vector<10x32xf32>
    %77 = arith.addf %74, %76 : vector<10x32xf32>
    %c0_50 = arith.constant 0 : index
    %c0_51 = arith.constant 0 : index
    %78 = vector.load %arg21[%c0_50, %c0_51] : memref<10x32xf32, #tpu.memory_space<vmem>>, vector<10x32xf32>
    tpu.vector_store %arg21[%c0_50, %c0_51], %77 {strides = array<i32>} : memref<10x32xf32, #tpu.memory_space<vmem>>, vector<10x32xf32>,
    %c2_i32 = arith.constant 2 : i32
    %79 = arith.cmpi eq, %arg0, %c2_i32 : i32
    %80 = arith.extui %79 : i1 to i32
    %c0_i32_52 = arith.constant 0 : i32
    %81 = arith.cmpi ne, %80, %c0_i32_52 : i32
    scf.if %81 {
      %c0_53 = arith.constant 0 : index
      %c0_54 = arith.constant 0 : index
      %82 = vector.load %arg20[%c0_53, %c0_54] : memref<10x4xf32, #tpu.memory_space<vmem>>, vector<10x4xf32>
      %cst_55 = arith.constant dense<0xFF800000> : vector<4xf32>
      %83 = vector.multi_reduction <maximumf>, %82, %cst_55 [0] : vector<10x4xf32> to vector<4xf32>
      %84 = vector.shape_cast %83 : vector<4xf32> to vector<1x4xf32>
      %85 = vector.broadcast %84 : vector<1x4xf32> to vector<10x4xf32>
      %86 = arith.subf %82, %85 : vector<10x4xf32>
      %87 = math.exp %86 : vector<10x4xf32>
      %cst_56 = arith.constant dense<0.000000e+00> : vector<4xf32>
      %88 = vector.multi_reduction <add>, %87, %cst_56 [0] : vector<10x4xf32> to vector<4xf32>
      %89 = vector.shape_cast %88 : vector<4xf32> to vector<1x4xf32>
      %cst_57 = arith.constant 1.000000e-30 : f32
      %90 = vector.broadcast %cst_57 : f32 to vector<1x4xf32>
      %91 = arith.maximumf %89, %90 : vector<1x4xf32>
      %92 = tpu.reciprocal %91 {approx = true} : vector<1x4xf32> -> vector<1x4xf32>
      %93 = vector.broadcast %92 : vector<1x4xf32> to vector<10x4xf32>
      %94 = arith.mulf %87, %93 : vector<10x4xf32>
      %c0_58 = arith.constant 0 : index
      %c0_59 = arith.constant 0 : index
      %95 = vector.load %arg10[%c0_58, %c0_59] : memref<4x32xf32, #tpu.memory_space<vmem>>, vector<4x32xf32>
      %cst_60 = arith.constant dense<0.000000e+00> : vector<10x32xf32>
      %96 = tpu.matmul %94, %95, %cst_60 {dimension_numbers = #tpu.dot_dimension_numbers<[1], [0], [0], [1], [0, 0, 1, 1], [], []>} : vector<10x4xf32>, vector<4x32xf32>, vector<10x32xf32> -> vector<10x32xf32>
      %c0_61 = arith.constant 0 : index
      %c0_62 = arith.constant 0 : index
      %97 = vector.load %arg21[%c0_61, %c0_62] : memref<10x32xf32, #tpu.memory_space<vmem>>, vector<10x32xf32>
      %98 = arith.mulf %97, %96 : vector<10x32xf32>
      %c0_63 = arith.constant 0 : index
      %c0_64 = arith.constant 0 : index
      %99 = vector.load %arg11[%c0_63, %c0_64] : memref<32x128xf32, #tpu.memory_space<vmem>>, vector<32x128xf32>
      %cst_65 = arith.constant dense<0.000000e+00> : vector<10x128xf32>
      %100 = tpu.matmul %98, %99, %cst_65 {dimension_numbers = #tpu.dot_dimension_numbers<[1], [0], [0], [1], [0, 0, 1, 1], [], []>} : vector<10x32xf32>, vector<32x128xf32>, vector<10x128xf32> -> vector<10x128xf32>
      %c0_66 = arith.constant 0 : index
      %c0_67 = arith.constant 0 : index
      %101 = vector.load %arg16[%c0_66, %c0_67] : memref<10x128xf32, #tpu.memory_space<vmem>>, vector<10x128xf32>
      tpu.vector_store %arg16[%c0_66, %c0_67], %100 {strides = array<i32>} : memref<10x128xf32, #tpu.memory_space<vmem>>, vector<10x128xf32>,
    } else {
    }
    return
  }
  func.func @transform_0(%arg0: i32) -> (i32, i32) {
    %c0_i32 = arith.constant 0 : i32
    %c0_i32_0 = arith.constant 0 : i32
    %c0_i32_1 = arith.constant 0 : i32
    return %c0_i32, %c0_i32_0 : i32, i32
  }
  func.func @transform_1(%arg0: i32) -> (i32, i32) {
    %c0_i32 = arith.constant 0 : i32
    %c0_i32_0 = arith.constant 0 : i32
    %c0_i32_1 = arith.constant 0 : i32
    return %c0_i32, %c0_i32_0 : i32, i32
  }
  func.func @transform_2(%arg0: i32) -> (i32, i32) {
    %c0_i32 = arith.constant 0 : i32
    %c0_i32_0 = arith.constant 0 : i32
    %c0_i32_1 = arith.constant 0 : i32
    return %c0_i32, %c0_i32_0 : i32, i32
  }
  func.func @transform_3(%arg0: i32) -> (i32, i32) {
    %c0_i32 = arith.constant 0 : i32
    %c0_i32_0 = arith.constant 0 : i32
    %c0_i32_1 = arith.constant 0 : i32
    return %c0_i32, %c0_i32_0 : i32, i32
  }
  func.func @transform_4(%arg0: i32) -> (i32, i32) {
    %c0_i32 = arith.constant 0 : i32
    %c0_i32_0 = arith.constant 0 : i32
    %c0_i32_1 = arith.constant 0 : i32
    return %c0_i32, %c0_i32_0 : i32, i32
  }
  func.func @transform_5(%arg0: i32) -> (i32, i32) {
    %c0_i32 = arith.constant 0 : i32
    %c0_i32_0 = arith.constant 0 : i32
    %c0_i32_1 = arith.constant 0 : i32
    return %c0_i32, %c0_i32_0 : i32, i32
  }
  func.func @transform_6(%arg0: i32) -> (i32, i32) {
    %c0_i32 = arith.constant 0 : i32
    %c0_i32_0 = arith.constant 0 : i32
    %c0_i32_1 = arith.constant 0 : i32
    return %c0_i32, %c0_i32_0 : i32, i32
  }
  func.func @transform_7(%arg0: i32) -> (i32, i32) {
    %c0_i32 = arith.constant 0 : i32
    %c0_i32_0 = arith.constant 0 : i32
    %c0_i32_1 = arith.constant 0 : i32
    return %c0_i32, %c0_i32_0 : i32, i32
  }
  func.func @transform_8(%arg0: i32) -> (i32, i32) {
    %c0_i32 = arith.constant 0 : i32
    %c0_i32_0 = arith.constant 0 : i32
    %c0_i32_1 = arith.constant 0 : i32
    return %c0_i32, %c0_i32_0 : i32, i32
  }
  func.func @transform_9(%arg0: i32) -> (i32, i32) {
    %c0_i32 = arith.constant 0 : i32
    %c0_i32_0 = arith.constant 0 : i32
    %c0_i32_1 = arith.constant 0 : i32
    return %c0_i32, %c0_i32_0 : i32, i32
  }
  func.func @transform_10(%arg0: i32) -> (i32, i32) {
    %c0_i32 = arith.constant 0 : i32
    %c0_i32_0 = arith.constant 0 : i32
    %c0_i32_1 = arith.constant 0 : i32
    return %c0_i32, %c0_i32_0 : i32, i32
  }
  func.func @transform_11(%arg0: i32) -> (i32, i32) {
    %c0_i32 = arith.constant 0 : i32
    %c0_i32_0 = arith.constant 0 : i32
    return %arg0, %c0_i32 : i32, i32
  }
  func.func @transform_12(%arg0: i32) -> (i32, i32) {
    %c0_i32 = arith.constant 0 : i32
    %c0_i32_0 = arith.constant 0 : i32
    return %arg0, %c0_i32 : i32, i32
  }
  func.func @transform_13(%arg0: i32) -> (i32, i32) {
    %c0_i32 = arith.constant 0 : i32
    %c0_i32_0 = arith.constant 0 : i32
    return %arg0, %c0_i32 : i32, i32
  }
  func.func @transform_14(%arg0: i32) -> (i32, i32, i32) {
    %c0_i32 = arith.constant 0 : i32
    %c0_i32_0 = arith.constant 0 : i32
    %c0_i32_1 = arith.constant 0 : i32
    return %arg0, %c0_i32, %c0_i32_0 : i32, i32, i32
  }
  func.func @transform_15(%arg0: i32) -> (i32, i32) {
    %c0_i32 = arith.constant 0 : i32
    %c0_i32_0 = arith.constant 0 : i32
    %c0_i32_1 = arith.constant 0 : i32
    return %c0_i32, %c0_i32_0 : i32, i32
  }
}

</mosaic_0001>

<bundles_post_ra>
// kernel: gat_conv_forward.1
= control target key start
LH: loop header
LB: loop body
LE: loop exit
PB: predicated region body
PF: predicated region fallthrough
CT: control target
= control target key end

     0   :  { %s2028_s18 = smov 0   ;;  %s2271_s0 = inlined_call_operand.vmem [shape: f32[10,16], index: 0, kind: input, shape index: {}]   ;;  %s2272_s1 = inlined_call_operand.vmem [shape: f32[16,32], index: 1, kind: input, shape index: {}]   ;;  %s2273_s2 = inlined_call_operand.vmem [shape: f32[1,32], index: 2, kind: input, shape index: {}]   ;;  %s2274_s3 = inlined_call_operand.vmem [shape: f32[32,4], index: 3, kind: input, shape index: {}]   ;;  %s2275_s4 = inlined_call_operand.vmem [shape: f32[32,4], index: 4, kind: input, shape index: {}]   ;;  %s2276_s5 = inlined_call_operand.vmem [shape: f32[4,32], index: 5, kind: input, shape index: {}]   ;;  %s2277_s6 = inlined_call_operand.vmem [shape: f32[1,32], index: 6, kind: input, shape index: {}]   ;;  %s2278_s7 = inlined_call_operand.vmem [shape: f32[32,4], index: 7, kind: input, shape index: {}]   ;;  %s2279_s8 = inlined_call_operand.vmem [shape: f32[1,4], index: 8, kind: input, shape index: {}]   ;;  %s2280_s9 = inlined_call_operand.vmem [shape: f32[4,32], index: 9, kind: input, shape index: {}]   ;;  %s2281_s10 = inlined_call_operand.vmem [shape: f32[32,128], index: 10, kind: input, shape index: {}]   ;;  %s2282_s11 = inlined_call_operand.vmem [shape: f32[24,4], index: 11, kind: input, shape index: {}]   ;;  %s2283_s12 = inlined_call_operand.vmem [shape: s32[24,1], index: 12, kind: input, shape index: {}]   ;;  %s2284_s13 = inlined_call_operand.vmem [shape: s32[24,1], index: 13, kind: input, shape index: {}]   ;;  %s2285_s14 = inlined_call_operand.vmem [shape: s32[3,1,8], index: 14, kind: input, shape index: {}]   ;;  %s2286_s15 = inlined_call_operand.vmem [shape: f32[10,128], index: 15, kind: output, shape index: {}]  }
   0x1   :  { %2289 = sst [smem:[#allocation8_spill]] %s2286_s15 }
   0x2 LB: > { %2290 = sst [smem:[#allocation7_spill]] %s1939_s18  ;;  %s2034_s19 = sadd.s32 4294967295, %s1939_s18   ;;  %s1939_s18 = sphi %s2028_s18, %s25_s18  }
   0x3   : > { %p1692_p0 = scmp.ge.s32.totalorder %s1939_s18, 1  ;;  %p457_p1 = scmp.lt.s32.totalorder %s1939_s18, 4 }
   0x5   : > { %p458_p2 = pnand %p1692_p0, %p457_p1 }
   0x6   : > { %p510_p3 = scmp.lt.s32.totalorder (!%p458_p2), %s2034_s19, 2  ;;  %p1696_p4 = scmp.ne.s32.totalorder (!%p458_p2), %s2034_s19, 0 }
   0x7   : > { %461 = sbr.rel (%p458_p2) target bundleno = 1739 (0x6cb), region = 80 }
   0xe   : > { %s2040_s20 = scalar_select %p510_p3, %s2034_s19, 2 }
   0xf   : > { %529 = sbr.rel (%p1696_p4) target bundleno = 452 (0x1c4), region = 84  ;;  %v532_v0 = vld [vmem:[%s2272_s1] sm:$0xff] (!%p1696_p4)  ;;  %v533_v1 = vld [vmem:[%s2272_s1 + $0x8] sm:$0xff] (!%p1696_p4)  ;;  %vm541_vm0 = vcmask (!%p1696_p4), 130048   ;;  %v637_v11 = vld [vmem:[%s2274_s3 + $0x10] sm:$0xff] (!%p1696_p4)  ;;  %vm639_vm1 = vcmask (!%p1696_p4), 261120  }
  0x10   : > { %s2043_s21 = sshll.u32 %s2040_s20, 3  ;;  %v530_v2 = vld [vmem:[%s2271_s0] sm:$0xff] (!%p1696_p4)  ;;  %v1868_v3 = vpack.c.bf16 (!%p1696_p4), %v533_v1, %v532_v0  ;;  %v636_v5 = vld [vmem:[%s2274_s3 + $0x8] sm:$0xff] (!%p1696_p4)  ;;  %v638_v12 = vld [vmem:[%s2274_s3 + $0x18] sm:$0xff] (!%p1696_p4)  ;;  %vm809_vm2 = vcmask (!%p1696_p4), 254976   ;;  %v1941_v17 = vmov (!%p1696_p4), 0.0  }
  0x11   : > { %s513_s27 = scalar_lea.vmem %s2282_s11, %s2043_s21  ;;  %s517_s30 = scalar_lea.vmem %s2283_s12, %s2043_s21  ;;  %1780 = vmatprep.mubr.msk.f32.mxu0 (!%p1696_p4), %vm541_vm0, %v530_v2  ;;  %v635_v4 = vld [vmem:[%s2274_s3] sm:$0xff] (!%p1696_p4)  ;;  %v726_v8 = vld [vmem:[%s2275_s4 + $0x8] sm:$0xff] (!%p1696_p4)  ;;  %v727_v13 = vld [vmem:[%s2275_s4 + $0x10] sm:$0xff] (!%p1696_p4)  ;;  %v1876_v14 = vpack.c.bf16 (!%p1696_p4), %v638_v12, %v637_v11  ;;  %808 = vst.msk [vmem:[#allocation6] sm:$0xff] (!%p1696_p4), %vm639_vm1, %v1941_v17  ;;  %vm633_vm3 = vcmask (!%p1696_p4), 253952   ;;  %vm631_vm4 = vcmask (!%p1696_p4), 257024  }
  0x12   : > { %s521_s18 = scalar_lea.vmem %s2284_s13, %s2043_s21  ;;  %v1872_v6 = vpack.c.bf16 (!%p1696_p4), %v636_v5, %v635_v4  ;;  %v725_v7 = vld [vmem:[%s2275_s4] sm:$0xff] (!%p1696_p4)  ;;  %1869 = vmatprep.subr.bf16.mxu0 (!%p1696_p4), %v1868_v3  ;;  %v531_v10 = vld [vmem:[%s2271_s0 + $0x8] sm:$0x3] (!%p1696_p4)  ;;  %v728_v15 = vld [vmem:[%s2275_s4 + $0x18] sm:$0xff] (!%p1696_p4)  ;;  %810 = vst.msk [vmem:[#allocation6 + $0x8] sm:$0x3] (!%p1696_p4), %vm809_vm2, %v1941_v17 }
  0x13   : > { %v1880_v9 = vpack.c.bf16 (!%p1696_p4), %v726_v8, %v725_v7  ;;  %1871 = vmatpush3.bf16.msra.mxu0 (!%p1696_p4), %v1868_v3  ;;  %v1884_v16 = vpack.c.bf16 (!%p1696_p4), %v728_v15, %v727_v13  ;;  %v1697_v18 = vld [vmem:[%s2273_s2] ss:$0 sm:$0xff] (!%p1696_p4)  ;;  %vm723_vm5 = vcmask (!%p1696_p4), 25600   ;;  %vm721_vm6 = vcmask (!%p1696_p4), 31744  }
  0x14   : > { %1873 = vmatprep.subr.bf16.mxu1 (!%p1696_p4), %v1872_v6  ;;  %v1942_v25 = vmov (!%p1696_p4), -1e+30  }
  0x15   : > { %1881 = vmatprep.subr.bf16.mxu0 (!%p1696_p4), %v1880_v9  ;;  %1875 = vmatpush3.bf16.msra.mxu1 (!%p1696_p4), %v1872_v6  ;;  %807 = vst.msk [vmem:[#allocation5 + $0x8] sm:$0x3] (!%p1696_p4), %vm723_vm5, %v1942_v25 }
  0x16   : > { %1781 = vmatmul.mubr.msk.f32.vlgmr.msra.gmra.mrb[0].mxu0 %vm541_vm0, %v531_v10  ;;  %1877 = vmatprep.subr.bf16.mxu1 %v1876_v14  ;;  %806 = vst.msk [vmem:[#allocation5] sm:$0xff] %vm721_vm6, %v1942_v25 }
  0x17   : > { %1883 = vmatpush3.bf16.msra.mxu0 %v1880_v9 }
  0x18   : > { %1885 = vmatprep.subr.bf16.mxu0 %v1884_v16 }
  0x19   : > { %1879 = vmatpush3.bf16.msra.mxu1 %v1876_v14 }
  0x1b   : > { %1887 = vmatpush3.bf16.msra.mxu0 %v1884_v16 }
  0xe9   : > { %v1782_v19 = vpop.f32.mrb[0].mxu0 }
  0xea   : > { %v620_v20 = vadd.f32 %v1782_v19, %v1697_v18  ;;  %v614_v21 = vpop.f32.mrb[1].mxu0 }
  0xeb   : > { %v615_v22 = vadd.f32 %v1697_v18, %v614_v21 }
  0xec   : > { %v1730_v23 = vpack.c.bf16 %v620_v20, %v620_v20 }
  0xed   : > { %v1729_v24 = vpack.c.bf16 %v615_v22, %v615_v22  ;;  %1791 = vmatprep.mubr.msk.f32.mxu1 %vm639_vm1, %v615_v22  ;;  %1802 = vmatprep.mubr.msk.f32.mxu0 %vm639_vm1, %v615_v22 }
  0xee   : > { %634 = vst.msk [vmem:[#allocation2 + $0x4] sm:$0x1] %vm633_vm3, %v1730_v23  ;;  %1792 = vmatmul.mubr.msk.f32.vlgmr.msra.gmra.mrb[0].mxu1 %vm639_vm1, %v620_v20  ;;  %1803 = vmatmul.mubr.msk.f32.vlgmr.msra.gmra.mrb[2].mxu0 %vm639_vm1, %v620_v20 }
  0xef   : > { %632 = vst.msk [vmem:[#allocation2] sm:$0xf] %vm631_vm4, %v1729_v24 }
 0x1c1   : > { %v1793_v26 = vpop.f32.mrb[0].mxu1  ;;  %v1804_v27 = vpop.f32.mrb[2].mxu0 }
 0x1c2   : > { %724 = vst.msk [vmem:[#allocation3 + $0x8] sm:$0x3] %vm723_vm5, %v1793_v26  ;;  %805 = vst.msk [vmem:[#allocation4 + $0x8] sm:$0x3] %vm723_vm5, %v1804_v27  ;;  %v712_v28 = vpop.f32.mrb[1].mxu1  ;;  %v795_v29 = vpop.f32.mrb[3].mxu0 }
 0x1c3   : > { %722 = vst.msk [vmem:[#allocation3] sm:$0xff] %vm721_vm6, %v712_v28  ;;  %804 = vst.msk [vmem:[#allocation4] sm:$0xff] %vm721_vm6, %v795_v29 }
 0x1c4 PF: > { %v812_v30 = vld [vmem:[%s521_s18] sm:$0xff]  ;;  %vm834_vm7 = vcmask 1041408   ;;  %v813_v32 = vlaneseq  ;;  %v1943_v33 = vmov 0   ;;  %v1944_v34 = vmov 0.0|0.0   ;;  %s2291_s22 = scalar_lea.vmem %s2285_s14, %s2040_s20  ;;  %v1073_v6 = vld [vmem:[%s2278_s7 + $0x8] sm:$0xff]  ;;  %v1074_v8 = vld [vmem:[%s2278_s7 + $0x10] sm:$0xff] }
 0x1c5   : > { %1925 = vset.pattern.permute.xlu0 %v1943_v33  ;;  %1888 = vmatprep.subr.bf16.mxu0 %v1944_v34  ;;  %v2117_v36 = vld [vmem:[%s2291_s22] ss:$0 sm:$0xff]  ;;  %vm1945_vm8 = vmmov 1   ;;  %vm1946_vm10 = vmmov 0   ;;  %v1947_v44 = vmov 0.0   ;;  %vm1174_vm11 = vcmask 64512  }
 0x1c6   : > { %820 = vperm.xlu0 %1925, %v812_v30   ;;  %vm2119_vm9 = vmpackc.low %vm834_vm7, %vm1945_vm8  ;;  %v2123_v39 = vand.u32 127, %v813_v32  ;;  %1892 = vmatprep.subr.bf16.mxu1 %v1944_v34  ;;  %v2126_v42 = vshrl.u32 %v813_v32, 7  ;;  %v811_v43 = vld [vmem:[%s517_s30] sm:$0xff]  ;;  %vm1190_vm13 = vcmask 58368   ;;  %vm830_vm15 = vcmask 80896   ;;  %v1075_v9 = vld [vmem:[%s2278_s7 + $0x18] sm:$0xff] }
 0x1c7   : > { %1809 = vmatprep.mubr.msk.f32.mxu0 %vm1946_vm10, %v1947_v44  ;;  %1816 = vmatprep.mubr.msk.f32.mxu1 %vm1946_vm10, %v1947_v44  ;;  %v985_v56 = vld [vmem:[%s2276_s5] sm:$0xf]  ;;  %vm997_vm1 = vcmask 1043456   ;;  %vm993_vm2 = vcmask 31744   ;;  %v1900_v10 = vpack.c.bf16 %v1075_v9, %v1074_v8  ;;  %vm1076_vm8 = vcmask 261120   ;;  %p1721_p5 = scmp.ne.s32.totalorder %s2034_s19, 2 }
 0x1c8   : > { %vm1170_vm12 = vcmp.eq.s32.totalorder %v2126_v42, %v2117_v36  ;;  %v2142_v46 = vadd.s32 8, %v2126_v42  ;;  %v984_v59 = vld [vmem:[%s513_s27] sm:$0xff]  ;;  %v1542_v8 = vld [vmem:[%s2281_s10 + $0x8] sm:$0xff] (!%p1721_p5)  ;;  %s2294_s22 = sld [smem:[#allocation8_spill]] (!%p1721_p5) }
 0x1c9   : > { %v829_v35 = vld [vmem:[#allocation4 + $0x8] sm:$0x3]  ;;  %v827_v41 = vld [vmem:[#allocation3 + $0x8] sm:$0x3]  ;;  %v1172_v47 = vsel %vm1170_vm12, %v2123_v39, 4294967295 }
 0x1ca   : > { %v828_v31 = vld [vmem:[#allocation4] sm:$0xff]  ;;  %v826_v40 = vld [vmem:[#allocation3] sm:$0xff]  ;;  %816 = vperm.xlu0 %1925, %v811_v43   ;;  %v1175_v48 = vsel %vm1174_vm11, %v1172_v47, 2147483648  ;;  %vm1171_vm14 = vcmp.eq.s32.totalorder %v2142_v46, %v2117_v36  ;;  %v1072_v5 = vld [vmem:[%s2278_s7] sm:$0xff] }
 0x1cb   : > { %v1889_v37 = vpack.c.bf16 %v829_v35, %v828_v31  ;;  %v1893_v45 = vpack.c.bf16 %v827_v41, %v826_v40  ;;  %v1177_v49 = vshra.s32 %v1175_v48, 16  ;;  %v1173_v50 = vsel %vm1171_vm14, %v2123_v39, 4294967295  ;;  %v1710_v19 = vld [vmem:[%s2277_s6] ss:$0 sm:$0xff]  ;;  %v1296_v47 = vld [vmem:[#allocation5 + $0x8] sm:$0x3] }
 0x1cc   : > { %v1191_v51 = vsel %vm1190_vm13, %v1173_v50, 2147483648  ;;  %v1176_v61 = vand.u32 65535, %v1175_v48  ;;  %v1897_v7 = vpack.c.bf16 %v1073_v6, %v1072_v5  ;;  %v1714_v33 = vld [vmem:[%s2279_s8] ss:$0 sm:$0xff]  ;;  %v1295_v48 = vld [vmem:[#allocation5] sm:$0xff] }
 0x1cd   : > { %1891 = vmatpush3.bf16.msk.msra.mxu0 %vm2119_vm9, %v1889_v37  ;;  %1895 = vmatpush3.bf16.msk.msra.mxu1 %vm2119_vm9, %v1893_v45  ;;  %v1179_v52 = vcvt.s32.f32 %v1177_v49  ;;  %v1193_v53 = vshra.s32 %v1191_v51, 16  ;;  %v1192_v63 = vand.u32 65535, %v1191_v51  ;;  %v1926_v38 = vld [vmem:[#allocation2] sm:$0x1f]  }
 0x1ce   : > { %1819 = vmatprep.subr.mxu0 %v1947_v44  ;;  %1896 = vmatprep.subr.bf16.mxu1 %v1944_v34  ;;  %v1178_v62 = vcvt.s32.f32 %v1176_v61  ;;  %v1364_v42 = vld [vmem:[#allocation6 + $0x8] sm:$0x3] }
 0x1cf   : > { %1180 = vmax.xlane.f32.xlu1 %v1179_v52  ;;  %v1195_v54 = vcvt.s32.f32 %v1193_v53  ;;  %v1194_v2 = vcvt.s32.f32 %v1192_v63  ;;  %v1360_v53 = vsel %vm1170_vm12, 1.0, %v1947_v44  ;;  %v1452_v46 = vld [vmem:[%s2280_s9] sm:$0xf] (!%p1721_p5) }
 0x1d3   : > { %1196 = vmax.xlane.f32.xlu1 %v1195_v54 }
 0x245   : > { %v821_v55 = vpop.permute.xlu0 %820 }
 0x246   : > { %vm822_vm0 = vcmp.eq.s32.totalorder %v821_v55, %v2123_v39 }
 0x247   : > { %v2164_v57 = vsel %vm822_vm0, 1.0, %v1947_v44  ;;  %vm1316_vm0 = vcmask 1044480  }
 0x248   : > { %1810 = vmatmul.mubr.msk.f32.vlgmr.msra.gmra.mrb[0].mxu0 %vm830_vm15, %v2164_v57  ;;  %v1318_v43 = vsel %vm1316_vm0, %v1926_v38, 0  ;;  %v1544_v38 = vld [vmem:[%s2281_s10 + $0x18] sm:$0xff] (!%p1721_p5) }
 0x249   : > { %v817_v58 = vpop.permute.xlu0 %816  ;;  %1820 = vmatpush3.msk.msra.mxu0 %vm997_vm1, %v985_v56  ;;  %1821 = vmatprep.mubr.msk.f32.mxu0 %vm1946_vm10, %v1947_v44 }
 0x24a   : > { %vm818_vm3 = vcmp.eq.s32.totalorder %v817_v58, %v2123_v39 }
 0x24b   : > { %v823_v60 = vsel %vm818_vm3, 1.0, %v1947_v44 }
 0x24c   : > { %1817 = vmatmul.mubr.msk.f32.vlgmr.msra.gmra.mrb[0].mxu1 %vm830_vm15, %v823_v60  ;;  %1822 = vmatmul.mubr.msk.f32.vlgmr.msra.gmra.mrb[2].mxu0 %vm993_vm2, %v984_v59 }
 0x24d   : > { %1832 = vmatprep.mubr.msk.f32.mxu1 %vm1946_vm10, %v1947_v44  ;;  %1898 = vmatpush3.bf16.msra.mxu1 %v1897_v7  ;;  %v1541_v7 = vld [vmem:[%s2281_s10] sm:$0xff] (!%p1721_p5) }
 0x24e   : > { %1899 = vmatprep.subr.bf16.mxu1 %v1944_v34 }
 0x251   : > { %1901 = vmatpush3.bf16.msra.mxu1 %v1900_v10  ;;  %v1902_v10 = vpack.c.bf16 (!%p1721_p5), %v1542_v8, %v1541_v7 }
 0x252   : > { %1846 = vmatprep.subr.bf16.mxu1 %v1947_v44 }
 0x25c   : > { %v1181_v0 = vpop.xlane.xlu1 %1180 }
 0x25d   : > { %vm1182_vm4 = vcmp.eq.f32.partialorder %v1179_v52, %v1181_v0  ;;  %v1187_v11 = vcvt.f32.s32 %v1181_v0 }
 0x25e   : > { %v1183_v1 = vsel %vm1182_vm4, %v1178_v62, -inf  ;;  %vm1304_vm4 = vcmask 25600   ;;  %v1363_v62 = vld [vmem:[#allocation6] sm:$0xff] }
 0x25f   : > { %1184 = vmax.xlane.f32.xlu0 %v1183_v1  ;;  %v1188_v12 = vshll.u32 %v1187_v11, 16 }
 0x260   : > { %v1197_v3 = vpop.xlane.xlu1 %1196 }
 0x261   : > { %vm1198_vm5 = vcmp.eq.f32.partialorder %v1195_v54, %v1197_v3  ;;  %v1203_v27 = vcvt.f32.s32 %v1197_v3  ;;  %v1361_v54 = vsel %vm1171_vm14, 1.0, %v1947_v44 }
 0x262   : > { %v1199_v4 = vsel %vm1198_vm5, %v1194_v2, -inf  ;;  %v1362_v59 = vpack.c.bf16 %v1361_v54, %v1360_v53 }
 0x263   : > { %1200 = vmax.xlane.f32.xlu1 %v1199_v4  ;;  %v1204_v29 = vshll.u32 %v1203_v27, 16 }
 0x2ec   : > { %v1185_v13 = vpop.xlane.xlu0 %1184 }
 0x2ed   : > { %v1186_v14 = vcvt.f32.s32 %v1185_v13 }
 0x2ef   : > { %v1189_v15 = vadd.s32 %v1188_v12, %v1186_v14 }
 0x2f0   : > { %v1201_v28 = vpop.xlane.xlu1 %1200 }
 0x2f1   : > { %vm1208_vm6 = vcmp.eq.s32.totalorder %v2123_v39, %v1189_v15  ;;  %v1202_v30 = vcvt.f32.s32 %v1201_v28 }
 0x2f2   : > { %vm1210_vm7 = vmand %vm1170_vm12, %vm1208_vm6  ;;  %vm1206_vm6 = vcmp.ge.s32.totalorder %v1189_v15, 0 }
 0x2f3   : > { %v1212_v16 = vsel %vm1210_vm7, 1.0, %v1947_v44  ;;  %v1205_v31 = vadd.s32 %v1204_v29, %v1202_v30 }
 0x2f4   : > { %1837 = vmatprep.mubr.msk.f32.mxu0 %vm1174_vm11, %v1212_v16 }
 0x2f5   : > { %vm1209_vm9 = vcmp.eq.s32.totalorder %v2123_v39, %v1205_v31  ;;  %v825_v39 = vpack.c.bf16 %v2164_v57, %v2164_v57  ;;  %vm1207_vm5 = vcmp.ge.s32.totalorder %v1205_v31, 0 }
 0x2f6   : > { %vm1211_vm3 = vmand %vm1171_vm14, %vm1209_vm9 }
 0x2f7   : > { %v1213_v45 = vsel %vm1211_vm3, 1.0, %v1947_v44 }
 0x31b   : > { %v904_v17 = vpop.f32.mrb[0].mxu0 }
 0x31c   : > { %v1811_v18 = vpop.f32.mrb[1].mxu0 }
 0x31f   : > { %v980_v20 = vpop.f32.mrb[0].mxu1  ;;  %v1067_v21 = vpop.f32.mrb[2].mxu0 }
 0x320   : > { %v981_v22 = vadd.f32 %v980_v20, %v904_v17  ;;  %v1068_v23 = vadd.f32 %v1710_v19, %v1067_v21  ;;  %v1818_v24 = vpop.f32.mrb[1].mxu1  ;;  %v1823_v25 = vpop.f32.mrb[3].mxu0 }
 0x322   : > { %v1071_v26 = vmax.f32 %v1068_v23, 0.0 }
 0x324   : > { %1833 = vmatmul.mubr.msk.f32.vlgmr.msra.gmra.mrb[2].mxu1 %vm1076_vm8, %v1071_v26 }
 0x325   : > { %1848 = vmatprep.mubr.msk.bf16.mxu1 %vm1946_vm10, %v1947_v44 }
 0x3f7   : > { %v1146_v32 = vpop.f32.mrb[2].mxu1 }
 0x3f8   : > { %v1150_v34 = vadd.f32 %v1146_v32, %v981_v22  ;;  %v1834_v35 = vpop.f32.mrb[3].mxu1 }
 0x3fa   : > { %v1158_v37 = vadd.f32 %v1714_v33, %v1150_v34 }
 0x3fc   : > { %vm1159_vm13 = vcmp.gt.f32.partialorder %v1158_v37, 0.0  ;;  %v1160_v40 = vmul.f32 0.2, %v1158_v37 }
 0x3fe   : > { %v1161_v41 = vsel %vm1159_vm13, %v1158_v37, %v1160_v40  ;;  %v1543_v37 = vld [vmem:[%s2281_s10 + $0x10] sm:$0xff] (!%p1721_p5) }
 0x3ff   : > { %1835 = vmatprep.subr.mxu0 %v1161_v41  ;;  %v1906_v40 = vpack.c.bf16 (!%p1721_p5), %v1544_v38, %v1543_v37 }
 0x400   : > { %1836 = vmatpush3.msra.mxu0 %v1161_v41 }
 0x401   : > { %1838 = vmatmul.mubr.msk.f32.vlgmr.msra.gmra.mrb[4].mxu0 %vm1174_vm11, %v1213_v45  ;;  %1840 = vmatprep.subr.bf16.mxu0 %v1947_v44 }
 0x402   : > { %1841 = vmatpush3.bf16.msra.mxu0 %v1318_v43  ;;  %1842 = vmatprep.mubr.msk.bf16.mxu0 %vm1946_vm10, %v1947_v44  ;;  %vm1416_vm10 = vcmask 254976  }
 0x403   : > { %1852 = vmatprep.subr.msk.mxu0 (!%p1721_p5), %vm997_vm1, %v1452_v46 }
 0x405   : > { %1843 = vmatmul.mubr.msk.bf16.vlgmr.msra.gmra.mrb[8].mxu0 %vm830_vm15, %v825_v39 }
 0x406   : > { %1853 = vmatpush3.msk.msra.mxu0 (!%p1721_p5), %vm997_vm1, %v1452_v46 }
 0x4d4   : > { %v1839_v49 = vpop.f32.mrb[4].mxu0 }
 0x4d5   : > { %v1302_v50 = vsel %vm1207_vm5, %v1839_v49, %v1296_v47  ;;  %v1286_v51 = vpop.f32.mrb[5].mxu0 }
 0x4d6   : > { %1305 = vst.msk [vmem:[#allocation5 + $0x8] sm:$0x3] %vm1304_vm4, %v1302_v50  ;;  %v1301_v52 = vsel %vm1206_vm6, %v1286_v51, %v1295_v48 }
 0x4d7   : > { %1303 = vst.msk [vmem:[#allocation5] sm:$0xff] %vm993_vm2, %v1301_v52 }
 0x4d8   : > { %v1354_v55 = vpop.f32.mrb[8].mxu0 }
 0x4d9   : > { %v1365_v56 = vpack.c.bf16 %v1354_v55, %v1354_v55  ;;  %v1844_v57 = vpop.f32.mrb[9].mxu0 }
 0x4da   : > { %v1357_v58 = vpop.f32.mrb[10].mxu0 }
 0x4db   : > { %v1370_v60 = vsel %vm997_vm1, %v1365_v56, 0  ;;  %v1845_v61 = vpop.f32.mrb[11].mxu0 }
 0x4dc   : > { %1847 = vmatpush3.bf16.msra.mxu1 %v1370_v60 }
 0x4dd   : > { %v1423_v4 = vld [vmem:[#allocation5 + $0x8] sm:$0x3] (!%p1721_p5)  ;;  %1903 = vmatprep.subr.bf16.mxu1 (!%p1721_p5), %v1902_v10 }
 0x4de   : > { %v1422_v3 = vld [vmem:[#allocation5] sm:$0xff] (!%p1721_p5)  ;;  %v1425_v6 = vsel (!%p1721_p5), %vm1304_vm4, %v1423_v4, -inf }
 0x4df   : > { %1849 = vmatmul.mubr.msk.bf16.vlgmr.msra.gmra.mrb[4].mxu1 %vm1174_vm11, %v1362_v59  ;;  %v1424_v5 = vsel (!%p1721_p5), %vm993_vm2, %v1422_v3, -inf }
 0x4e0   : > { %v1426_v9 = vmax.f32 (!%p1721_p5), %v1424_v5, %v1425_v6  ;;  %1905 = vmatpush3.bf16.msra.mxu1 (!%p1721_p5), %v1902_v10 }
 0x4e1   : > { %1907 = vmatprep.subr.bf16.mxu1 (!%p1721_p5), %v1906_v40 }
 0x4e2   : > { %v1427_v11 = vrot.slane (!%p1721_p5), %v1426_v9, 4 }
 0x4e4   : > { %v1428_v12 = vmax.f32 (!%p1721_p5), %v1426_v9, %v1427_v11  ;;  %1909 = vmatpush3.bf16.msra.mxu1 (!%p1721_p5), %v1906_v40 }
 0x4e6   : > { %v1429_v13 = vrot.slane (!%p1721_p5), %v1428_v12, 2 }
 0x4e8   : > { %v1430_v14 = vmax.f32 (!%p1721_p5), %v1428_v12, %v1429_v13 }
 0x4ea   : > { %v1431_v15 = vrot.slane (!%p1721_p5), %v1430_v14, 1 }
 0x4ec   : > { %v1432_v16 = vmax.f32 (!%p1721_p5), %v1430_v14, %v1431_v15 }
 0x4ee   : > { %v1433_v17 = vsub.f32 (!%p1721_p5), %v1422_v3, %v1432_v16  ;;  %v1434_v18 = vsub.f32 (!%p1721_p5), %v1423_v4, %v1432_v16 }
 0x4f0   : > { %v1435_v19 = vmul.f32 (!%p1721_p5), 1.442695, %v1433_v17  ;;  %v1437_v20 = vmul.f32 (!%p1721_p5), 1.442695, %v1434_v18 }
 0x4f2   : > { %1927 = vpow2.f32 (!%p1721_p5), %v1435_v19 }
 0x4f3   : > { %1929 = vpow2.f32 (!%p1721_p5), %v1437_v20 }
 0x4fc   : > { %v1928_v21 = vpop.eup (!%p1721_p5), %1927 }
 0x4fd   : > { %v1930_v22 = vpop.eup (!%p1721_p5), %1929  ;;  %v1439_v23 = vsel (!%p1721_p5), %vm993_vm2, %v1928_v21, 0.0 }
 0x4fe   : > { %v1440_v24 = vsel (!%p1721_p5), %vm1304_vm4, %v1930_v22, 0.0 }
 0x4ff   : > { %v1441_v25 = vadd.f32 (!%p1721_p5), %v1440_v24, %v1439_v23 }
 0x501   : > { %v1442_v26 = vrot.slane (!%p1721_p5), %v1441_v25, 4 }
 0x503   : > { %v1443_v27 = vadd.f32 (!%p1721_p5), %v1442_v26, %v1441_v25 }
 0x505   : > { %v1444_v28 = vrot.slane (!%p1721_p5), %v1443_v27, 2 }
 0x507   : > { %v1445_v29 = vadd.f32 (!%p1721_p5), %v1444_v28, %v1443_v27 }
 0x509   : > { %v1446_v30 = vrot.slane (!%p1721_p5), %v1445_v29, 1 }
 0x50b   : > { %v1447_v31 = vadd.f32 (!%p1721_p5), %v1446_v30, %v1445_v29 }
 0x50d   : > { %v1448_v32 = vmax.f32 (!%p1721_p5), %v1447_v31, 1e-30 }
 0x50f   : > { %1931 = vrcp.f32 (!%p1721_p5), %v1448_v32 }
 0x519   : > { %v1932_v33 = vpop.eup (!%p1721_p5), %1931 }
 0x51a   : > { %v1450_v34 = vmul.f32 (!%p1721_p5), %v1932_v33, %v1928_v21  ;;  %v1451_v35 = vmul.f32 (!%p1721_p5), %v1932_v33, %v1930_v22 }
 0x51c   : > { %1854 = vmatprep.mubr.msk.f32.mxu0 (!%p1721_p5), %vm993_vm2, %v1450_v34 }
 0x51d   : > { %1855 = vmatmul.mubr.msk.f32.vlgmr.msra.gmra.mrb[0].mxu0 (!%p1721_p5), %vm993_vm2, %v1451_v35 }
 0x5b1   : > { %1421 = sbr.rel (%p1721_p5) target bundleno = 1739 (0x6cb), region = 88 }
 0x5b2   : > { %v1406_v63 = vpop.f32.mrb[4].mxu1 }
 0x5b3   : > { %v1413_v0 = vadd.f32 %v1406_v63, %v1363_v62  ;;  %v1850_v1 = vpop.f32.mrb[5].mxu1 }
 0x5b4   : > { %v1409_v2 = vpop.f32.mrb[6].mxu1 }
 0x5b5   : > { %1415 = vst.msk [vmem:[#allocation6] sm:$0xff] %vm1076_vm8, %v1413_v0  ;;  %v1414_v36 = vadd.f32 %v1409_v2, %v1364_v42  ;;  %v1851_v44 = vpop.f32.mrb[7].mxu1 }
 0x5b7   : > { %1417 = vst.msk [vmem:[#allocation6 + $0x8] sm:$0x3] %vm1416_vm10, %v1414_v36 }
 0x5bc   : > { %v1537_v41 = vld [vmem:[#allocation6] sm:$0xff] }
 0x5be   : > { %v1538_v45 = vld [vmem:[#allocation6 + $0x8] sm:$0x3] }
 0x5f0   : > { %v1856_v43 = vpop.f32.mrb[0].mxu0 }
 0x5f1   : > { %v1528_v39 = vpop.f32.mrb[1].mxu0  ;;  %v1540_v48 = vmul.f32 %v1856_v43, %v1538_v45 }
 0x5f2   : > { %v1539_v47 = vmul.f32 %v1537_v41, %v1528_v39 }
 0x5f4   : > { %1865 = vmatprep.mubr.msk.f32.mxu1 %vm1076_vm8, %v1539_v47 }
 0x5f5   : > { %1866 = vmatmul.mubr.msk.f32.vlgmr.msra.gmra.mrb[0].mxu1 %vm1076_vm8, %v1540_v48 }
 0x6c8   : > { %v1867_v49 = vpop.f32.mrb[0].mxu1 }
 0x6c9   : > { %1627 = vst [vmem:[%s2294_s22 + $0x8] sm:$0x3] %v1867_v49  ;;  %v1617_v50 = vpop.f32.mrb[1].mxu1 }
 0x6ca   : > { %1626 = vst [vmem:[%s2294_s22] sm:$0xff] %v1617_v50 }
 0x6cb PF: > { %s2295_s20 = sld [smem:[#allocation7_spill]] }
 0x6d1   : > { %s25_s18 = sadd.s32 1, %s2295_s20  }
 0x6d2   : > { %p22_p6 = scmp.ge.s32.totalorder %s25_s18, 5  }
 0x6d4   :  { %24 = sbr.rel (!%p22_p6) target bundleno = 2 (0x2), region = 123 }

</bundles_post_ra>
